<compile_context>
chip_gen: v7x
topology: tpu7x:2x2x1
jax: 0.10.0
libtpu: 0.0.40
codegen_flags: <defaults>
</compile_context>

<pallas_src>
import math

import jax
import jax.numpy as jnp
import numpy as np
from jax.experimental import pallas as pl
from jax.experimental.pallas import tpu as pltpu


# ---------------------------------------------------------------------------
# Pallas kernel: one (O, C) x (C, tT) matmul per (batch, time-tile) grid step.
# ---------------------------------------------------------------------------
def merger_kernel(w_ref, meg_ref, out_ref):
    # w_ref  : (O, C)     precomputed softmax merge weights (batch-independent)
    # meg_ref: (1, C, tT) one time-tile of one batch element
    # out_ref: (1, O, tT)
    out_ref[0] = jnp.dot(
        w_ref[...], meg_ref[0], preferred_element_type=jnp.float32
    ).astype(out_ref.dtype)


# ---------------------------------------------------------------------------
# Batch-independent weight computation (hoisted out of the kernel).
# ---------------------------------------------------------------------------
def normalize_positions(sensor_xyz: jnp.ndarray) -> jnp.ndarray:
    """sensor_xyz: (1, C, 3) -> (C, 2) normalized positions, NaN fallback -0.1.

    Matches the PyTorch module exactly: no epsilon in the min/max
    normalization, and the NaN fallback value (-0.1) later gets the same
    +margin shift inside the Fourier embedding as normal positions do.
    """
    positions = sensor_xyz[0, :, :2].astype(jnp.float32)
    has_nan = jnp.any(jnp.isnan(positions))
    x = positions[:, 0]
    y = positions[:, 1]
    xn = (x - x.min()) / (x.max() - x.min())
    yn = (y - y.min()) / (y.max() - y.min())
    norm = jnp.stack([xn, yn], axis=-1)
    return jnp.where(has_nan, jnp.full_like(positions, -0.1), norm)


def merge_weights(sensor_xyz, heads, *, pos_dim: int, margin: float = 0.2):
    """Compute the (O, C) softmax channel-merge weights (batch-independent)."""
    positions = normalize_positions(sensor_xyz)                    # (C, 2)
    C = positions.shape[0]
    n_freqs = int(round((pos_dim // 2) ** 0.5))
    assert 2 * n_freqs * n_freqs == pos_dim, "pos_dim must be 2 * k^2"
    width = 1.0 + 2.0 * margin
    freqs = jnp.arange(n_freqs, dtype=jnp.float32)
    p = 2.0 * math.pi * freqs / width                              # (F,)
    pp = positions + margin                                        # (C, 2)
    # loc[c, i, j] = pp_x[c] * p[i] + pp_y[c] * p[j]   (row-major flatten)
    loc = (pp[:, 0, None, None] * p[:, None]
           + pp[:, 1, None, None] * p[None, :]).reshape(C, -1)     # (C, F*F)
    emb = jnp.concatenate([jnp.cos(loc), jnp.sin(loc)], axis=-1)   # (C, pos_dim)
    scores = jnp.einsum("cd,od->oc", emb, heads.astype(jnp.float32))  # (O, C)
    return jax.nn.softmax(scores, axis=-1)


# ---------------------------------------------------------------------------
# Wrapper
# ---------------------------------------------------------------------------
def _pick_time_tile(T: int, cap: int) -> int:
    """Large 128-multiple time tile; full extent when T already fits in it."""
    if T <= cap:
        return T            # single full-extent block (always a legal block dim)
    return cap              # cap is a 128-multiple; ragged last block is masked


def channel_merger(meg, sensor_xyz, heads, *, pos_dim: int,
                   margin: float = 0.2,
                   compute_dtype=jnp.bfloat16,
                   out_dtype=jnp.float32,
                   time_tile: int = 2048,
                   vmem_limit_bytes=None):
    """ChannelMerger forward.  compute_dtype=bf16 is the production default
    (halves streamed HBM bytes, f32 accumulation kept); pass jnp.float32 for
    bit-tight numerics.  out_dtype=bf16 additionally halves the output write.
    """
    B, C, T = meg.shape
    O = heads.shape[0]
    compute_dtype = jnp.dtype(compute_dtype)
    out_dtype = jnp.dtype(out_dtype)
    assert time_tile % 128 == 0, "time_tile must be a multiple of 128"

    # Hoisted (tiny) computation: (O, C) softmax weights, done once per call.
    w = merge_weights(sensor_xyz, heads, pos_dim=pos_dim, margin=margin)

    # Cast the streamed operands (bf16 by default).
    if meg.dtype != compute_dtype:
        meg = meg.astype(compute_dtype)
    w = w.astype(compute_dtype)

    # Zero-pad the channel axis to the sublane packing (8 f32 / 16 bf16) so the
    # (1, C, tT) and (O, C) blocks map to fully packed vregs.  Padding columns
    # of W are exact zeros -> result unchanged.
    sublane = max(8, 32 // compute_dtype.itemsize)
    C_pad = ((C + sublane - 1) // sublane) * sublane
    if C_pad != C:
        meg = jnp.pad(meg, ((0, 0), (0, C_pad - C), (0, 0)))
        w = jnp.pad(w, ((0, 0), (0, C_pad - C)))

    tT = _pick_time_tile(T, time_tile)
    grid = (B, pl.cdiv(T, tT))

    cost = pl.CostEstimate(
        flops=2 * B * O * C_pad * T,
        bytes_accessed=(B * C_pad * T + O * C_pad) * compute_dtype.itemsize
                       + B * O * T * out_dtype.itemsize,
        transcendentals=0,
    )

    return pl.pallas_call(
        merger_kernel,
        out_shape=jax.ShapeDtypeStruct((B, O, T), out_dtype),
        grid_spec=pltpu.PrefetchScalarGridSpec(
            num_scalar_prefetch=0,
            grid=grid,
            in_specs=[
                pl.BlockSpec((O, C_pad), lambda b, t: (0, 0)),
                pl.BlockSpec((1, C_pad, tT), lambda b, t: (b, 0, t)),
            ],
            out_specs=pl.BlockSpec((1, O, tT), lambda b, t: (b, 0, t)),
        ),
        compiler_params=pltpu.CompilerParams(
            dimension_semantics=("parallel", "parallel"),
            vmem_limit_bytes=vmem_limit_bytes),
        cost_estimate=cost,
    )(w, meg)


# ---------------------------------------------------------------------------
# Pure-JAX reference (mirrors the PyTorch forward, eval mode), independent
# of the kernel path's weight computation.
# ---------------------------------------------------------------------------
def channel_merger_ref(meg, sensor_xyz, heads, *, pos_dim: int,
                       margin: float = 0.2):
    B, C, T = meg.shape
    positions = normalize_positions(sensor_xyz)                     # (C, 2)
    n_freqs = int(round((pos_dim // 2) ** 0.5))
    width = 1.0 + 2.0 * margin
    freqs = jnp.arange(n_freqs, dtype=jnp.float32)
    p_x = 2.0 * math.pi * freqs[:, None] / width                    # (F, 1)
    p_y = 2.0 * math.pi * freqs / width                             # (F,)
    pp = positions + margin
    loc = pp[:, None, None, 0] * p_x + pp[:, None, None, 1] * p_y   # (C, F, F)
    loc = loc.reshape(C, -1)
    emb = jnp.concatenate([jnp.cos(loc), jnp.sin(loc)], axis=-1)    # (C, pos_dim)
    scores = jnp.einsum("cd,od->oc", emb, heads)                    # (O, C)
    w = jax.nn.softmax(scores, axis=-1)
    return jnp.einsum("bct,oc->bot", meg, w)                        # (B, O, T)


# ---------------------------------------------------------------------------
if __name__ == "__main__":
    key = jax.random.PRNGKey(0)

    def make_inputs(B, C, T, CHOUT, POS_DIM, k):
        k_meg, k_xyz, k_heads = jax.random.split(k, 3)
        meg = jax.random.normal(k_meg, (B, C, T), dtype=jnp.float32)
        sensor_xyz = jax.random.uniform(k_xyz, (1, C, 3), dtype=jnp.float32)
        heads = jax.random.normal(k_heads, (CHOUT, POS_DIM), dtype=jnp.float32)
        heads = heads / math.sqrt(POS_DIM)
        return meg, sensor_xyz, heads

    k1, k2, k3 = jax.random.split(key, 3)
    POS_DIM = 32

    # Case 1: strict f32 numerics; full-extent 128-multiple time tile.
    meg, xyz, heads = make_inputs(2, 16, 384, 8, POS_DIM, k1)
    out = jax.block_until_ready(channel_merger(
        meg, xyz, heads, pos_dim=POS_DIM, compute_dtype=jnp.float32))
    ref = channel_merger_ref(meg, xyz, heads, pos_dim=POS_DIM)
    assert out.shape == (2, 8, 384), out.shape
    np.testing.assert_allclose(np.asarray(out), np.asarray(ref),
                               rtol=1e-4, atol=1e-4)

    # Case 2: production bf16 stream + bf16 output, ragged cdiv time grid
    # (T=200, time_tile=128 -> 2 tiles, masked last block) and channel
    # padding (C=20 -> 32 sublanes for bf16).
    meg, xyz, heads = make_inputs(2, 20, 200, 8, POS_DIM, k2)
    out = jax.block_until_ready(channel_merger(
        meg, xyz, heads, pos_dim=POS_DIM, compute_dtype=jnp.bfloat16,
        out_dtype=jnp.bfloat16, time_tile=128))
    ref = channel_merger_ref(meg, xyz, heads, pos_dim=POS_DIM)
    assert out.shape == (2, 8, 200), out.shape
    np.testing.assert_allclose(np.asarray(out, dtype=np.float32),
                               np.asarray(ref), rtol=3e-2, atol=3e-2)

    # Case 3: library defaults (bf16 stream, f32 out, tT=min(T, 2048)).
    meg, xyz, heads = make_inputs(1, 24, 512, 8, POS_DIM, k3)
    out = jax.block_until_ready(
        channel_merger(meg, xyz, heads, pos_dim=POS_DIM))
    ref = channel_merger_ref(meg, xyz, heads, pos_dim=POS_DIM)
    assert out.shape == (1, 8, 512), out.shape
    np.testing.assert_allclose(np.asarray(out), np.asarray(ref),
                               rtol=3e-2, atol=3e-2)

    print("KERNEL_OK")
</pallas_src>

<mosaic_0001>
module attributes {stable_mosaic.version = 11 : i64} {
  func.func @merger_kernel(%arg0: i32, %arg1: i32, %arg2: memref<8x16xf32, #tpu.memory_space<vmem>>, %arg3: memref<1x16x384xf32, #tpu.memory_space<vmem>>, %arg4: memref<1x8x384xf32, #tpu.memory_space<vmem>>) attributes {dimension_semantics = [#tpu.dimension_semantics<parallel>, #tpu.dimension_semantics<parallel>], iteration_bounds = array<i64: 2, 1>, scalar_prefetch = 0 : i64, scratch_operands = 0 : i64, tpu.core_type = #tpu.core_type<tc>, window_params = [{pipeline_mode = #tpu.pipeline_mode<synchronous>, transform_indices = @transform_0, window_bounds = array<i64: 8, 16>}, {transform_indices = @transform_1, window_bounds = array<i64: 1, 16, 384>}, {transform_indices = @transform_2, window_bounds = array<i64: 1, 8, 384>}]} {
    %c0 = arith.constant 0 : index
    %c0_0 = arith.constant 0 : index
    %0 = vector.load %arg2[%c0, %c0_0] : memref<8x16xf32, #tpu.memory_space<vmem>>, vector<8x16xf32>
    %c0_1 = arith.constant 0 : index
    %c0_2 = arith.constant 0 : index
    %c0_3 = arith.constant 0 : index
    %1 = vector.load %arg3[%c0_1, %c0_2, %c0_3] : memref<1x16x384xf32, #tpu.memory_space<vmem>>, vector<1x16x384xf32>
    %2 = vector.shape_cast %1 : vector<1x16x384xf32> to vector<16x384xf32>
    %cst = arith.constant dense<0.000000e+00> : vector<8x384xf32>
    %3 = tpu.matmul %0, %2, %cst {dimension_numbers = #tpu.dot_dimension_numbers<[1], [0], [0], [1], [0, 0, 1, 1], [], []>} : vector<8x16xf32>, vector<16x384xf32>, vector<8x384xf32> -> vector<8x384xf32>
    %c0_4 = arith.constant 0 : index
    %c0_5 = arith.constant 0 : index
    %c0_6 = arith.constant 0 : index
    %4 = vector.load %arg4[%c0_4, %c0_5, %c0_6] : memref<1x8x384xf32, #tpu.memory_space<vmem>>, vector<1x8x384xf32>
    %5 = vector.shape_cast %4 : vector<1x8x384xf32> to vector<8x384xf32>
    %6 = vector.shape_cast %3 : vector<8x384xf32> to vector<1x8x384xf32>
    tpu.vector_store %arg4[%c0_4, %c0_5, %c0_6], %6 {strides = array<i32>} : memref<1x8x384xf32, #tpu.memory_space<vmem>>, vector<1x8x384xf32>,
    return
  }
  func.func @transform_0(%arg0: i32, %arg1: i32) -> (i32, i32) {
    %c0_i32 = arith.constant 0 : i32
    %c0_i32_0 = arith.constant 0 : i32
    %c0_i32_1 = arith.constant 0 : i32
    return %c0_i32, %c0_i32_0 : i32, i32
  }
  func.func @transform_1(%arg0: i32, %arg1: i32) -> (i32, i32, i32) {
    %c0_i32 = arith.constant 0 : i32
    %c0_i32_0 = arith.constant 0 : i32
    return %arg0, %c0_i32, %arg1 : i32, i32, i32
  }
  func.func @transform_2(%arg0: i32, %arg1: i32) -> (i32, i32, i32) {
    %c0_i32 = arith.constant 0 : i32
    %c0_i32_0 = arith.constant 0 : i32
    return %arg0, %c0_i32, %arg1 : i32, i32, i32
  }
}

</mosaic_0001>

<bundles_post_ra>
// kernel: tpu_custom_call.1
= control target key start
LH: loop header
LB: loop body
LE: loop exit
PB: predicated region body
PF: predicated region fallthrough
CT: control target
= control target key end

     0   :  { %7 = vsyncpa [#allocation3], 0  ;;  %s965_s0 = inlined_call_operand.hbm [shape: f32[8,16], index: 0, kind: input, shape index: {}]   ;;  %s966_s1 = inlined_call_operand.hbm [shape: f32[2,16,384], index: 1, kind: input, shape index: {}]   ;;  %s967_s2 = inlined_call_operand.hbm [shape: f32[2,8,384], index: 2, kind: output, shape index: {}]  }
   0x1   :  { %8 = vsyncpa [#allocation6], 0 }
   0x2   :  { %10 = vsyncpa [#allocation6 + $0x1], 0 }
   0x3   :  { %11 = vsyncpa [#allocation4], 0 }
   0x4   :  { %13 = vsyncpa [#allocation4 + $0x1], 0  ;;  %s745_s9 = smov 0   ;;  %s747_s10 = smov 0  }
   0x5   :  { %s749_s11 = smov 0   ;;  %s751_s12 = smov 0  }
   0x6   :  { %s753_s13 = smov 0   ;;  %s755_s14 = smov 0  }
   0x7 LB: > { %s463_s15 = sadd.s32 4294967295, %s720_s14   ;;  %s464_s16 = sadd.s32 4294967294, %s720_s14   ;;  %s720_s14 = sphi %s755_s14, %s19_s14   ;;  %s716_s13 = sphi %s753_s13, %s995_s13   ;;  %s712_s12 = sphi %s751_s12, %s994_s12   ;;  %s708_s11 = sphi %s749_s11, %s993_s11   ;;  %s704_s10 = sphi %s747_s10, %s992_s10   ;;  %s700_s9 = sphi %s745_s9, %s991_s9  }
   0x8   : > { %s61_s17 = sadd.s32 1, %s708_s11  ;;  %p68_p0 = scmp.ne.s32.totalorder %s708_s11, %s704_s10 }
   0x9   : > { %p69_p1 = scmp.eq.s32.totalorder %s720_s14, 0  ;;  %p74_p2 = scmp.ne.s32.totalorder %s704_s10, %s700_s9 }
   0xa   : > { %p783_p3 = scmp.eq.s32.totalorder %s463_s15, 0  ;;  %p100_p4 = scmp.eq.s32.totalorder %s463_s15, 1 }
   0xb   : > { %p787_p5 = por %p69_p1, %p68_p0  ;;  %p106_p6 = scmp.eq.s32.totalorder %s464_s16, 1 }
   0xc   : > { %s974_s18 = scalar_select %p783_p3, 1, 0 }
   0xd   : > { %p793_p7 = por %p783_p3, %p74_p2  ;;  %p797_p8 = por %p100_p4, %p68_p0 }
   0xe   : > { %p801_p9 = por %p106_p6, %p74_p2  ;;  %p465_p10 = scmp.ge.s32.totalorder %s720_s14, 1 }
   0xf   : > { %s976_s20 = scalar_select %p793_p7, 1, 0 }
  0x10   : > { %s977_s21 = scalar_select %p797_p8, 1, 0 }
  0x11   : > { %s978_s22 = scalar_select %p801_p9, 1, 0 }
  0x12   : > { %p113_p11 = scmp.lt.s32.totalorder %s720_s14, 3  ;;  %s722_s24 = smov [#allocation2]  }
  0x13   : > { %s126_s25 = sshll.u32 %s722_s24, 4  ;;  %p519_p1 = scmp.lt.s32.totalorder %s720_s14, 2  ;;  %s127_s25 = int_to_ptr.vmem [resolvable:$true] %s126_s25 }
  0x14   : > { %p808_p13 = pnand %p465_p10, %p113_p11  ;;  %s31_s28 = sadd.s32 1, %s716_s13 }
  0x15   : > { %p817_p4 = pnand %p519_p1, %p787_p5  ;;  %p828_p6 = scmp.ge.s32.totalorder %s31_s28, 2 }
  0x16   : > { %s979_s23 = scalar_select %p808_p13, 1, 0 }
  0x17   : > { %p506_p0 = pneg %p808_p13  ;;  %s137_s30 = sand.u32 1, %s708_s11  }
  0x18   : > { %s980_s26 = scalar_select %p817_p4, 1, 0 }
  0x19   : > { %p823_p2 = pnand %p506_p0, %p783_p3  ;;  %s576_s5 = scalar_lea.hbm %s965_s0, 128 }
  0x1a   : > { %s982_s29 = scalar_select %p828_p6, 1, 0 }
  0x1b   : > { %p577_p5 = scmp.ne.s32.totalorder %s965_s0, %s576_s5  ;;  %p578_p10 = pneg %p823_p2 }
  0x1c   : > { %p583_p0 = scmp.lt.u32.totalorder %s576_s5, %s965_s0 }
  0x1d   : > { %p579_p11 = pnand %p578_p10, %p577_p5 }
  0x1f   : > { %p580_p1 = pneg %p579_p11 }
  0x21   : > { %p585_p12 = pnand %p583_p0, %p580_p1 }
  0x23   : > { %588 = shalt.err (!%p585_p12)
}
  0x24   : > { %s589_s16 = scalar_lea.vmem %s127_s25, 128  ;;  %p597_p3 = scmp.lt.s32.totalorder %s127_s25, %s127_s25 }
  0x25   : > { %p590_p9 = scmp.ne.s32.totalorder %s127_s25, %s589_s16  ;;  %p598_p13 = scmp.lt.s32.totalorder %s589_s16, %s589_s16 }
  0x27   : > { %p592_p8 = pnand %p590_p9, %p578_p10  ;;  %p599_p4 = por %p598_p13, %p597_p3 }
  0x29   : > { %p593_p7 = pneg %p592_p8 }
  0x2b   : > { %p600_p6 = pnand %p599_p4, %p593_p7 }
  0x2d   : > { %603 = shalt.err (!%p600_p6)
}
  0x2e   : > { %509 = dma.hbm_to_vmem [thread:$0]  (!%p823_p2), %s965_s0, 128, %s127_s25, [#allocation3]  }
  0x2f   : > { %p983_p9 = scmp.ne.s32.totalorder %s982_s29, 0  ;;  %s493_s3 = smul.u32 48, %s137_s30 }
  0x30   : > { %s494_s5 = smul.u32 768, %s716_s13  ;;  %s868_s29 = scalar_lea.sflag [#allocation6], %s137_s30 }
  0x31   : > { %s997_s28 = smov (%p983_p9, %s31_s28), 0  ;;  %s141_s8 = scalar_lea.vmem [#allocation5], %s493_s3 }
  0x32   : > { %s56_s4 = ssub.s32 %s716_s13, %s997_s28  ;;  %s859_s7 = scalar_lea.hbm %s966_s1, %s494_s5 }
  0x33   : > { %p59_p3 = scmp.eq.s32.totalorder %s56_s4, 0  ;;  %s150_s15 = sshll.u32 %s141_s8, 4  ;;  %s866_s15 = int_to_ptr.vmem [resolvable:$true] %s150_s15 }
  0x34   : > { %s604_s16 = scalar_lea.hbm %s859_s7, 768  ;;  %p984_p8 = scmp.ne.s32.totalorder %s980_s26, 0 }
  0x35   : > { %s864_s25 = scalar_select %p59_p3, %s708_s11, %s61_s17  }
  0x36   : > { %p605_p7 = scmp.ne.s32.totalorder %s859_s7, %s604_s16  ;;  %p606_p12 = pneg %p984_p8 }
  0x37   : > { %s609_s3 = scalar_lea.hbm %s966_s1, 1536  ;;  %p610_p2 = scmp.lt.u32.totalorder %s859_s7, %s966_s1 }
  0x38   : > { %p607_p13 = pnand %p606_p12, %p605_p7  ;;  %p611_p6 = scmp.lt.u32.totalorder %s609_s3, %s604_s16 }
  0x39   : > { %p613_p10 = scmp.lt.u32.totalorder %s604_s16, %s859_s7 }
  0x3a   : > { %p608_p4 = pneg %p607_p13  ;;  %p612_p5 = por %p611_p6, %p610_p2 }
  0x3c   : > { %p614_p11 = por %p613_p10, %p612_p5 }
  0x3e   : > { %p615_p1 = pnand %p614_p11, %p608_p4 }
  0x40   : > { %618 = shalt.err (!%p615_p1)
}
  0x41   : > { %s619_s17 = scalar_lea.vmem %s866_s15, 768  ;;  %s723_s30 = smov [#allocation5]  }
  0x42   : > { %p620_p0 = scmp.ne.s32.totalorder %s866_s15, %s619_s17  ;;  %s624_s27 = sshll.u32 %s723_s30, 4  ;;  %s625_s27 = int_to_ptr.vmem [resolvable:$false] %s624_s27 }
  0x43   : > { %s626_s6 = scalar_lea.vmem %s625_s27, 1536  ;;  %p627_p7 = scmp.lt.s32.totalorder %s866_s15, %s625_s27 }
  0x44   : > { %p622_p9 = pnand %p620_p0, %p606_p12  ;;  %p628_p13 = scmp.lt.s32.totalorder %s626_s6, %s619_s17 }
  0x46   : > { %p623_p3 = pneg %p622_p9  ;;  %p629_p2 = por %p628_p13, %p627_p7 }
  0x48   : > { %p630_p6 = pnand %p629_p2, %p623_p3 }
  0x4a   : > { %633 = shalt.err (!%p630_p6)
}
  0x4b   : > { %s724_s8 = smov 384   ;;  %s725_s16 = smov 24  }
  0x4c   : > { %513 = dma.hbm_to_vmem [thread:$0]  (!%p984_p8), %s859_s7, 768, %s866_s15, %s868_s29, %s724_s8, %s724_s8, %s725_s16  }
  0x4d   : > { %p985_p12 = scmp.ne.s32.totalorder %s979_s23, 0 }
  0x4e   : > { %p986_p4 = scmp.ne.s32.totalorder (!%p985_p12), %s974_s18, 0 }
  0x4f   : > { %162 = sbr.rel (%p985_p12) target bundleno = 326 (0x146), region = 28 }
  0x56   : > { %687 = dma.done.wait (%p986_p4), [#allocation3], 128  }
  0x57   : > { %689 = vsyncadd (%p986_p4), [#allocation3], 4294967168  ;;  %s903_s19 = sand.u32 1, %s704_s10   ;;  %p987_p5 = scmp.ne.s32.totalorder %s976_s20, 0 }
  0x58   : > { %s495_s24 = smul.u32 48, %s903_s19  ;;  %s169_s3 = scalar_lea.sflag [#allocation6], %s903_s19 }
  0x5a   : > { %s172_s4 = scalar_lea.vmem [#allocation5], %s495_s24 }
  0x5b   : > { %691 = dma.done.wait (%p987_p5), %s169_s3, 768  }
  0x5c   : > { %693 = vsyncadd (%p987_p5), %s169_s3, 4294966528  ;;  %v726_v0 = vmov 0.0|0.0   ;;  %v727_v1 = vmov 0.0   ;;  %vm728_vm0 = vmmov 0   ;;  %v197_v2 = vld [vmem:[%s172_s4 + $0x8] sm:$0xff]  ;;  %v200_v3 = vld [vmem:[%s172_s4 + $0x20] sm:$0xff] }
  0x5d   : > { %490 = vmatprep.subr.bf16.mxu1 %v726_v0  ;;  %270 = vmatprep.mubr.f32.mxu0 %v727_v1  ;;  %v196_v4 = vld [vmem:[%s172_s4] sm:$0xff]  ;;  %v486_v5 = vpack.c.bf16 %v200_v3, %v197_v2  ;;  %v199_v6 = vld [vmem:[%s172_s4 + $0x18] sm:$0xff]  ;;  %v198_v7 = vld [vmem:[%s172_s4 + $0x10] sm:$0xff]  ;;  %vm202_vm1 = vcmask 130048   ;;  %s496_s18 = smul.u32 24, %s903_s19  ;;  %s351_s5 = scalar_lea.sflag [#allocation4], %s903_s19 }
  0x5e   : > { %483 = vmatprep.mubr.msk.f32.mxu1 %vm728_vm0, %v727_v1  ;;  %v201_v8 = vld [vmem:[%s172_s4 + $0x28] sm:$0xff]  ;;  %v488_v9 = vpack.c.bf16 %v199_v6, %v196_v4  ;;  %s497_s26 = smul.u32 384, %s712_s12  ;;  %p988_p10 = scmp.ne.s32.totalorder %s977_s21, 0 }
  0x5f   : > { %v491_v10 = vpack.c.bf16 %v201_v8, %v198_v7  ;;  %487 = vmatprep.subr.bf16.mxu0 %v486_v5  ;;  %v195_v11 = vld [vmem:[#allocation2] sm:$0xff]  ;;  %s192_s20 = scalar_lea.vmem [#allocation7], %s496_s18  ;;  %s729_s12 = smov [#allocation7]  }
  0x60   : > { %489 = vmatpush1.bf16.msra.mxu0 %v488_v9  ;;  %s367_s23 = sshll.u32 %s192_s20, 4  ;;  %s918_s29 = scalar_lea.hbm %s967_s2, %s497_s26  ;;  %s913_s23 = int_to_ptr.vmem [resolvable:$true] %s367_s23 }
  0x61   : > { %492 = vmatpush3.bf16.msra.mxu1 %v491_v10  ;;  %s634_s17 = scalar_lea.vmem %s913_s23, 384  ;;  %s638_s30 = sshll.u32 %s729_s12, 4  ;;  %s639_s30 = int_to_ptr.vmem [resolvable:$false] %s638_s30 }
  0x62   : > { %p635_p8 = scmp.ne.s32.totalorder %s913_s23, %s634_s17  ;;  %s640_s27 = scalar_lea.vmem %s639_s30, 768 }
  0x63   : > { %471 = vmatmul.mubr.msk.f32.vlgmr.msra.gmra.mrb[0].mxu0 %vm202_vm1, %v195_v11  ;;  %p641_p0 = scmp.lt.s32.totalorder %s913_s23, %s639_s30  ;;  %p642_p9 = scmp.lt.s32.totalorder %s640_s27, %s634_s17 }
  0x64   : > { %484 = vmatmul.mubr.msk.f32.vlgmr.msra.gmra.mrb[0].mxu1 %vm202_vm1, %v195_v11  ;;  %p636_p11 = pnand %p635_p8, %p988_p10 }
  0x65   : > { %p643_p3 = por %p642_p9, %p641_p0 }
  0x66   : > { %p637_p1 = pneg %p636_p11 }
  0x68   : > { %p644_p7 = pnand %p643_p3, %p637_p1 }
 0x136   : > { %v272_v12 = vpop.f32.mrb[0].mxu0 }
 0x137   : > { %v343_v13 = vpop.f32.mrb[0].mxu1  ;;  %347 = vst [vmem:[%s192_s20] sm:$0xff] %v272_v12  ;;  %v274_v14 = vpop.f32.mrb[1].mxu0 }
 0x138   : > { %349 = vst [vmem:[%s192_s20 + $0x10] sm:$0xff] %v343_v13  ;;  %v485_v15 = vpop.f32.mrb[1].mxu1  ;;  %348 = vst [vmem:[%s192_s20 + $0x8] sm:$0xff] %v274_v14 }
 0x139   : > { %647 = shalt.err (!%p644_p7)
}
 0x13a   : > { %s648_s6 = scalar_lea.hbm %s918_s29, 384  ;;  %s652_s19 = scalar_lea.hbm %s967_s2, 768 }
 0x13b   : > { %p649_p13 = scmp.ne.s32.totalorder %s918_s29, %s648_s6  ;;  %p653_p12 = scmp.lt.u32.totalorder %s918_s29, %s967_s2 }
 0x13c   : > { %p654_p4 = scmp.lt.u32.totalorder %s652_s19, %s648_s6  ;;  %p656_p8 = scmp.lt.u32.totalorder %s648_s6, %s918_s29 }
 0x13d   : > { %p650_p2 = pnand %p649_p13, %p988_p10 }
 0x13e   : > { %p655_p5 = por %p654_p4, %p653_p12 }
 0x13f   : > { %p651_p6 = pneg %p650_p2 }
 0x140   : > { %p657_p11 = por %p656_p8, %p655_p5 }
 0x142   : > { %p658_p1 = pnand %p657_p11, %p651_p6 }
 0x144   : > { %661 = shalt.err (!%p658_p1)
}
 0x145   : > { %504 = dma.vmem_to_hbm [thread:$0]  (%p988_p10), %s913_s23, 384, %s918_s29, %s351_s5  }
 0x146 PF: > { %s379_s4 = sand.u32 1, %s700_s9   ;;  %p989_p0 = scmp.ne.s32.totalorder %s978_s22, 0 }
 0x147   : > { %p990_p9 = scmp.ge.s32.totalorder %s720_s14, 2  ;;  %s380_s18 = scalar_lea.sflag [#allocation4], %s379_s4 }
 0x149   : > { %p515_p3 = pnand %p990_p9, %p989_p0 }
 0x14b   : > { %695 = dma.done.wait (!%p515_p3), %s380_s18, 384  }
 0x14c   : > { %697 = vsyncadd (!%p515_p3), %s380_s18, 4294966912  ;;  %s19_s14 = sadd.s32 1, %s720_s14   ;;  %s991_s9 = smov %s704_s10 }
 0x14d   : > { %p16_p7 = scmp.ge.s32.totalorder %s19_s14, 4   ;;  %s992_s10 = smov %s708_s11 }
 0x14e   : > { %s993_s11 = smov %s864_s25  ;;  %s994_s12 = smov %s716_s13 }
 0x14f   : > { %s995_s13 = smov %s997_s28  ;;  %18 = sbr.rel (!%p16_p7) target bundleno = 7 (0x7), region = 78 }
 0x156   :  { %385 = vsyncpa [#allocation3], 1 }
 0x157   :  { %387 = vsyncpa [#allocation3 + $0x1], 1 }
 0x158   :  { %388 = vsyncpa [#allocation6], 1 }
 0x159   :  { %390 = vsyncpa [#allocation6 + $0x1], 1 }
 0x15a   :  { %391 = vsyncpa [#allocation4], 1 }
 0x15b   :  { %393 = vsyncpa [#allocation4 + $0x1], 1 }

</bundles_post_ra>
